<compile_context>
chip_gen: v6e
topology: v6e:2x2x1
jax: 0.10.0
libtpu: 0.0.40
codegen_flags: <defaults>
</compile_context>

<pallas_src>
import functools

import jax
import jax.numpy as jnp
from jax import lax
from jax.experimental import pallas as pl
from jax.experimental.pallas import tpu as pltpu

_VMEM = pl.BlockSpec(memory_space=pltpu.MemorySpace.VMEM)


def _round_up(x, m):
    return ((x + m - 1) // m) * m


def _vmem_caps():
    """Return (row-tile byte budget, vmem_limit_bytes), tuned per chip generation."""
    try:
        cap = int(pltpu.get_tpu_info().vmem_capacity_bytes)
    except Exception:
        cap = 64 * 1024 * 1024        # conservative (v7x-sized) default
    budget = max(8 << 20, min(int(cap * 0.55), 80 << 20))
    limit = max(32 << 20, min(int(cap * 0.80), 100 << 20))
    return budget, limit


# ----------------------------------------------------------------------------
# Kernel 1: in-kernel embedding pooling (one-hot counts x resident table on the MXU)
#           -> tanh(Linear) -> reward head.  Output: lane-dense bf16 [TR, HP] slab
#           with cols [0,H) = hidden, col H = reward.
# ----------------------------------------------------------------------------
def _reward_model_kernel(mids_ref, emb_ref, wenc_ref, benc_ref, wrew_ref, brew_ref,
                         out_ref, *, hidden_size, pad_id, vocab_pad):
    mids = mids_ref[...]                                             # [TR, S] int32
    tr, seq = mids.shape
    valid = (mids != pad_id).astype(jnp.float32)                     # [TR, S]
    msum = jnp.maximum(jnp.sum(valid, axis=1, keepdims=True), 1.0)   # [TR, 1]
    inv_msum = pl.reciprocal(msum, approx=True)                      # EUP; hidden by mem roofline

    # In-kernel embedding "gather": one-hot token counts (exact small integers) times the
    # VMEM-resident embedding table on the MXU.  Masked-out tokens carry pad_id, which maps
    # to an all-zero embedding row, so they contribute nothing to the pooled sum.
    vid = lax.broadcasted_iota(jnp.int32, (tr, vocab_pad), 1)        # [TR, VP]
    counts = jnp.zeros((tr, vocab_pad), jnp.float32)
    for s in range(seq):                                             # static unroll over short S
        counts = counts + (mids[:, s:s + 1] == vid).astype(jnp.float32)
    pooled = jnp.dot(counts.astype(jnp.bfloat16), emb_ref[...],
                     preferred_element_type=jnp.float32) * inv_msum  # [TR, H]

    hidden_ext = jnp.tanh(
        jnp.dot(pooled.astype(jnp.bfloat16), wenc_ref[...],
                preferred_element_type=jnp.float32) + benc_ref[...])  # [TR, HP]
    # Reward head as VPU broadcast-mul + lane reduction (padding cols of wrew are zero);
    # scalar bias comes from SMEM.
    reward = (jnp.sum(hidden_ext * wrew_ref[...], axis=-1, keepdims=True)
              + brew_ref[0, 0])
    col = lax.broadcasted_iota(jnp.int32, hidden_ext.shape, 1)
    # Lane-dense slab: cols [0,H) = hidden, col H = reward, rest = tanh(0) = 0.
    out_ref[...] = jnp.where(col == hidden_size, reward, hidden_ext).astype(out_ref.dtype)


def _pick_row_tile(num_rows, seq, vocab_pad, hp, *, budget_bytes, max_tile=1024):
    # Budget against PADDED VMEM layouts plus in-kernel f32 intermediates (perf review).
    seq_lanes = max(_round_up(max(seq, 1), 128), 128)
    per_row = (2 * seq_lanes * 4        # double-buffered int32 masked-id tile (lane-padded)
               + 2 * hp * 2             # double-buffered bf16 output slab
               + 3 * vocab_pad * 4      # counts / one-hot compare scratch (f32)
               + 2 * hp * 4)            # hidden_ext / where intermediates (f32)
    tr = max(8, min(max_tile, budget_bytes // max(per_row, 1)))
    tr = (tr // 8) * 8
    rows8 = _round_up(num_rows, 8)
    if rows8 >= 16:
        # Keep >=2 grid steps so the "parallel" row axis can shard across v7x's two TCs.
        tr = min(tr, max(8, (rows8 // 2 // 8) * 8))
    return min(tr, rows8)


def reward_model_forward(mids, emb_pad, wenc_ext, benc_ext, wrew_ext, brew, *,
                         hidden_size, pad_id, row_tile, vmem_limit):
    r_pad, seq = mids.shape
    vp, hid = emb_pad.shape
    hp = wenc_ext.shape[1]
    grid = (r_pad // row_tile,)
    kernel = functools.partial(_reward_model_kernel, hidden_size=hidden_size,
                               pad_id=pad_id, vocab_pad=vp)
    return pl.pallas_call(
        kernel,
        out_shape=jax.ShapeDtypeStruct((r_pad, hp), jnp.bfloat16),
        grid_spec=pltpu.PrefetchScalarGridSpec(
            num_scalar_prefetch=0,
            grid=grid,
            in_specs=[
                pl.BlockSpec((row_tile, seq), lambda i: (i, 0)),   # the only row-streamed input
                pl.BlockSpec((vp, hid), lambda i: (0, 0)),         # embedding table stays resident
                pl.BlockSpec((hid, hp), lambda i: (0, 0)),         # encoder weights stay resident
                pl.BlockSpec((1, hp), lambda i: (0, 0)),           # encoder bias (padded, resident)
                pl.BlockSpec((1, hp), lambda i: (0, 0)),           # reward head weights (padded)
                pl.BlockSpec((1, 1), lambda i: (0, 0),
                             memory_space=pltpu.MemorySpace.SMEM),  # scalar reward bias
            ],
            out_specs=pl.BlockSpec((row_tile, hp), lambda i: (i, 0)),
        ),
        compiler_params=pltpu.CompilerParams(
            dimension_semantics=("parallel",),   # shards the row grid across TCs on v7x
            vmem_limit_bytes=vmem_limit,
        ),
    )(mids, emb_pad, wenc_ext, benc_ext, wrew_ext, brew)


# ----------------------------------------------------------------------------
# Kernel 2: fused hierarchy — per-level linear predictor + Plackett-Luce probs +
# in-kernel top-k item selection between levels (batch-0 ranking, matching the reference).
# ----------------------------------------------------------------------------
def _hier_pl_kernel(h_ref, wl_ref, bl_ref, *out_refs, level_item_counts):
    cur_h = h_ref[...]                                            # [B, N, H] f32
    bsz = cur_h.shape[0]
    num_levels_run = len(level_item_counts)
    for level, n in enumerate(level_item_counts):
        w = wl_ref[level:level + 1, :]                            # [1, H], already / temperature
        b = bl_ref[level:level + 1, :]                            # [1, 1], already / temperature
        s = jnp.sum(cur_h * w[None, :, :], axis=-1) + b           # [B, n] scaled rewards
        si = s[:, :, None]                                        # [B, n, 1]
        sj = s[:, None, :]                                        # [B, 1, n]
        i_idx = lax.broadcasted_iota(jnp.int32, (bsz, n, n), 1)
        j_idx = lax.broadcasted_iota(jnp.int32, (bsz, n, n), 2)
        # beats[b, i, j] <=> item j is ranked ahead of item i (descending order, index tiebreak)
        beats = (sj > si) | ((sj == si) & (j_idx < i_idx))
        rank = jnp.sum(beats.astype(jnp.float32), axis=-1)        # [B, n], exact small integers
        keep = jnp.logical_not(beats)
        # Mask to -inf BEFORE exp: no overflow on discarded (sj > si) entries.
        denom = jnp.sum(jnp.exp(jnp.where(keep, sj - si, -jnp.inf)), axis=-1)   # [B, n]
        prob_item = 1.0 / denom                                   # exact divide (user-visible prob)
        pos_f = lax.broadcasted_iota(jnp.float32, (bsz, n, n), 1)
        onehot_pos = pos_f == rank[:, None, :]
        # Scatter item probabilities into position order: out[b, p] = prob of rank-p item.
        out_refs[level][...] = jnp.sum(
            jnp.where(onehot_pos, prob_item[:, None, :], 0.0), axis=-1)
        if level + 1 < num_levels_run:
            # In-kernel "top_k": pick items with rank < n_next per batch-0's ranking.
            n_next = level_item_counts[level + 1]
            k_idx = lax.broadcasted_iota(jnp.float32, (n_next, n), 0)
            sel = (k_idx == rank[0:1, :]).astype(jnp.float32)     # [n_next, n] one-hot rows
            # MXU row selection (no [B, n_next, n, H] VPU intermediate).
            cur_h = jnp.stack(
                [jnp.dot(sel, cur_h[bi], preferred_element_type=jnp.float32)
                 for bi in range(bsz)], axis=0)                   # [B, n_next, H]


def hierarchical_levels_forward(hidden_states, w_level, b_level, *, temperature,
                                num_levels, level_sizes):
    bsz, num_items, _ = hidden_states.shape
    counts = []
    n = num_items
    for level in range(num_levels):
        if n <= 1:
            break
        counts.append(n)
        if level < num_levels - 1:
            n = min(level_sizes[level], n)
    if not counts:
        return []
    inv_t = 1.0 / float(temperature)
    wl = (w_level * inv_t).astype(jnp.float32)                      # [L, H]
    bl = (b_level * inv_t).reshape(num_levels, 1).astype(jnp.float32)
    kernel = functools.partial(_hier_pl_kernel, level_item_counts=tuple(counts))
    outs = pl.pallas_call(
        kernel,
        out_shape=tuple(jax.ShapeDtypeStruct((bsz, c), jnp.float32) for c in counts),
        in_specs=[_VMEM, _VMEM, _VMEM],
        out_specs=tuple(_VMEM for _ in counts),
    )(hidden_states, wl, bl)
    return list(outs)


# ----------------------------------------------------------------------------
# Forward pass (glue in JAX, compute in the two kernels above)
# ----------------------------------------------------------------------------
def hierarchical_plackett_luce_forward(input_ids_list, attention_mask_list, params, *,
                                       temperature=1.0, num_levels=2, level_sizes=(4, 2),
                                       row_tile=None):
    N = len(input_ids_list)
    B, S = input_ids_list[0].shape
    V, H = params["embedding"].shape
    HP = max(128, _round_up(H + 1, 128))     # lane-dense slab width (>= H + 1)
    VP = max(128, _round_up(V + 1, 128))     # lane-dense padded vocab (one-hot contraction dim)
    PAD_ID = VP - 1                          # maps to an all-zero embedding row

    ids = jnp.stack(input_ids_list, axis=1)                       # [B, N, S]
    mask = jnp.stack(attention_mask_list, axis=1)                 # [B, N, S]
    # Fold the attention mask into the id stream: masked-out tokens become PAD_ID.
    masked_ids = jnp.where(mask > 0, ids, PAD_ID).astype(jnp.int32)

    R = B * N
    mids_flat = masked_ids.reshape(R, S)

    budget, vmem_limit = _vmem_caps()
    tr = row_tile or _pick_row_tile(R, S, VP, HP, budget_bytes=budget)
    r_pad = ((R + tr - 1) // tr) * tr
    if r_pad != R:
        mids_flat = jnp.pad(mids_flat, ((0, r_pad - R), (0, 0)), constant_values=PAD_ID)

    # Zero-padded, lane-dense weights; embedding table stays VMEM-resident in kernel 1.
    # TODO(synk): DMA row-gather path for vocabularies too large to keep resident in VMEM.
    emb_pad = jnp.zeros((VP, H), jnp.float32).at[:V, :].set(
        params["embedding"]).astype(jnp.bfloat16)
    wenc_ext = jnp.zeros((H, HP), jnp.float32).at[:, :H].set(
        params["w_enc"]).astype(jnp.bfloat16)
    benc_ext = jnp.zeros((1, HP), jnp.float32).at[:, :H].set(params["b_enc"].reshape(1, H))
    wrew_ext = jnp.zeros((1, HP), jnp.float32).at[:, :H].set(params["w_reward"].reshape(1, H))
    brew = params["b_reward"].reshape(1, 1).astype(jnp.float32)

    slab = reward_model_forward(mids_flat, emb_pad, wenc_ext, benc_ext, wrew_ext, brew,
                                hidden_size=H, pad_id=PAD_ID, row_tile=tr,
                                vmem_limit=vmem_limit)
    slab = slab[:R].astype(jnp.float32)
    hidden_states = slab[:, :H].reshape(B, N, H)
    base_rewards = slab[:, H].reshape(B, N)

    level_rankings = hierarchical_levels_forward(
        hidden_states, params["w_level"], params["b_level"],
        temperature=temperature, num_levels=num_levels, level_sizes=level_sizes)

    final_ranking = level_rankings[-1] if level_rankings else jnp.zeros((1, 1), jnp.float32)
    return {
        "hierarchical_rankings": level_rankings,
        "final_ranking": final_ranking,
        "base_rewards": base_rewards,
        "hidden_states": hidden_states,
    }


# ----------------------------------------------------------------------------
# Pure-JAX references for validation
# ----------------------------------------------------------------------------
def _ref_pl(rewards, temperature):
    s = rewards / temperature
    ss = -jnp.sort(-s, axis=1)
    cols = [jax.nn.softmax(ss[:, p:], axis=1)[:, 0] for p in range(s.shape[1])]
    return jnp.stack(cols, axis=1)


def _reference_levels(hidden, w_level, b_level, *, temperature, num_levels, level_sizes):
    hi = lax.Precision.HIGHEST
    N = hidden.shape[1]
    level_rankings = []
    current_items = jnp.arange(N)
    for level in range(num_levels):
        n_cur = int(current_items.shape[0])
        if n_cur <= 1:
            break
        level_size = min(level_sizes[level], n_cur)
        lh = jnp.take(hidden, current_items, axis=1)
        lr = jnp.einsum("bnh,h->bn", lh, w_level[level], precision=hi) + b_level[level]
        level_rankings.append(_ref_pl(lr, temperature))
        if level < num_levels - 1:
            top_idx = lax.top_k(lr[0], level_size)[1]
            current_items = current_items[top_idx]
    return level_rankings


def _reference_forward(input_ids_list, attention_mask_list, params, *, temperature,
                       num_levels, level_sizes):
    hi = lax.Precision.HIGHEST
    ids = jnp.stack(input_ids_list, axis=1)
    mask = jnp.stack(attention_mask_list, axis=1).astype(jnp.float32)
    emb = jnp.take(params["embedding"], ids, axis=0)
    msum = jnp.maximum(mask.sum(-1, keepdims=True), 1.0)
    pooled = (emb * mask[..., None]).sum(axis=2) / msum
    hidden = jnp.tanh(jnp.einsum("bnh,hk->bnk", pooled, params["w_enc"], precision=hi)
                      + params["b_enc"][0])
    base_rewards = (jnp.einsum("bnh,hk->bnk", hidden, params["w_reward"], precision=hi)
                    + params["b_reward"][0])[..., 0]
    level_rankings = _reference_levels(
        hidden, params["w_level"], params["b_level"],
        temperature=temperature, num_levels=num_levels, level_sizes=level_sizes)
    return {"final_ranking": level_rankings[-1] if level_rankings else jnp.zeros((1, 1)),
            "base_rewards": base_rewards, "hidden_states": hidden,
            "hierarchical_rankings": level_rankings}


if __name__ == "__main__":
    B, N, S, H, V = 2, 8, 8, 32, 50
    num_levels, level_sizes, temperature = 2, (4, 2), 1.0

    key = jax.random.PRNGKey(0)
    keys = jax.random.split(key, 8)
    params = {
        "embedding": jax.random.normal(keys[0], (V, H), jnp.float32) * 0.1,
        "w_enc": jax.random.normal(keys[1], (H, H), jnp.float32) / jnp.sqrt(H),
        "b_enc": jax.random.normal(keys[2], (1, H), jnp.float32) * 0.01,
        "w_reward": jax.random.normal(keys[3], (H, 1), jnp.float32) / jnp.sqrt(H),
        "b_reward": jnp.zeros((1, 1), jnp.float32),
        "w_level": jax.random.normal(keys[4], (num_levels, H), jnp.float32) / jnp.sqrt(H),
        "b_level": jax.random.normal(keys[5], (num_levels,), jnp.float32) * 0.01,
    }
    ids = jax.random.randint(keys[6], (N, B, S), 0, V, dtype=jnp.int32)
    msk = (jax.random.uniform(keys[7], (N, B, S)) > 0.2).astype(jnp.int32)
    msk = msk.at[:, :, 0].set(1)  # at least one valid token per sequence
    input_ids_list = [ids[i] for i in range(N)]
    attention_mask_list = [msk[i] for i in range(N)]

    out = hierarchical_plackett_luce_forward(
        input_ids_list, attention_mask_list, params,
        temperature=temperature, num_levels=num_levels, level_sizes=level_sizes)
    jax.block_until_ready(out["final_ranking"])

    # Check 1: reward-model kernel vs pure-f32 reference (bf16 streaming -> looser tolerance).
    ref = _reference_forward(
        input_ids_list, attention_mask_list, params,
        temperature=temperature, num_levels=num_levels, level_sizes=level_sizes)
    assert out["final_ranking"].shape == ref["final_ranking"].shape
    assert jnp.allclose(out["hidden_states"], ref["hidden_states"], atol=5e-3, rtol=5e-3)
    assert jnp.allclose(out["base_rewards"], ref["base_rewards"], atol=5e-3, rtol=5e-3)
    # level-0 probabilities involve no discrete selection -> compare to the full f32 reference
    assert jnp.allclose(out["hierarchical_rankings"][0],
                        ref["hierarchical_rankings"][0], atol=5e-3, rtol=5e-3)

    # Check 2: fused hierarchy kernel vs pure-JAX hierarchy on the SAME hidden states
    # (decouples the discrete top-k selection from kernel-1 input quantization).
    ref_levels = _reference_levels(
        out["hidden_states"], params["w_level"], params["b_level"],
        temperature=temperature, num_levels=num_levels, level_sizes=level_sizes)
    assert len(out["hierarchical_rankings"]) == len(ref_levels)
    for a, b in zip(out["hierarchical_rankings"], ref_levels):
        assert a.shape == b.shape
        assert jnp.allclose(a, b, atol=2e-3, rtol=2e-3)
    assert jnp.allclose(out["final_ranking"], ref_levels[-1], atol=2e-3, rtol=2e-3)

    print("KERNEL_OK")
</pallas_src>

<mosaic_0001>
module attributes {stable_mosaic.version = 11 : i64} {
  func.func @_reward_model_kernel(%arg0: i32, %arg1: memref<8x8xi32, #tpu.memory_space<vmem>>, %arg2: memref<128x32xbf16, #tpu.memory_space<vmem>>, %arg3: memref<32x128xbf16, #tpu.memory_space<vmem>>, %arg4: memref<1x128xf32, #tpu.memory_space<vmem>>, %arg5: memref<1x128xf32, #tpu.memory_space<vmem>>, %arg6: memref<1x1xf32, #tpu.memory_space<smem>>, %arg7: memref<8x128xbf16, #tpu.memory_space<vmem>>) attributes {dimension_semantics = [#tpu.dimension_semantics<parallel>], iteration_bounds = array<i64: 2>, scalar_prefetch = 0 : i64, scratch_operands = 0 : i64, tpu.core_type = #tpu.core_type<tc>, window_params = [{transform_indices = @transform_0, window_bounds = array<i64: 8, 8>}, {pipeline_mode = #tpu.pipeline_mode<synchronous>, transform_indices = @transform_1, window_bounds = array<i64: 128, 32>}, {pipeline_mode = #tpu.pipeline_mode<synchronous>, transform_indices = @transform_2, window_bounds = array<i64: 32, 128>}, {pipeline_mode = #tpu.pipeline_mode<synchronous>, transform_indices = @transform_3, window_bounds = array<i64: 1, 128>}, {pipeline_mode = #tpu.pipeline_mode<synchronous>, transform_indices = @transform_4, window_bounds = array<i64: 1, 128>}, {transform_indices = @transform_5, window_bounds = array<i64: 1, 1>}, {transform_indices = @transform_6, window_bounds = array<i64: 8, 128>}]} {
    %c0 = arith.constant 0 : index
    %c0_0 = arith.constant 0 : index
    %0 = vector.load %arg1[%c0, %c0_0] : memref<8x8xi32, #tpu.memory_space<vmem>>, vector<8x8xi32>
    %c127_i32 = arith.constant 127 : i32
    %1 = vector.broadcast %c127_i32 : i32 to vector<8x8xi32>
    %2 = arith.cmpi ne, %0, %1 : vector<8x8xi32>
    %3 = arith.extui %2 : vector<8x8xi1> to vector<8x8xi32>
    %4 = arith.sitofp %3 : vector<8x8xi32> to vector<8x8xf32>
    %cst = arith.constant dense<0.000000e+00> : vector<8xf32>
    %5 = vector.multi_reduction <add>, %4, %cst [1] : vector<8x8xf32> to vector<8xf32>
    %6 = vector.shape_cast %5 : vector<8xf32> to vector<8x1xf32>
    %cst_1 = arith.constant 1.000000e+00 : f32
    %7 = vector.broadcast %cst_1 : f32 to vector<8x1xf32>
    %8 = arith.maximumf %6, %7 : vector<8x1xf32>
    %9 = tpu.reciprocal %8 {approx = true} : vector<8x1xf32> -> vector<8x1xf32>
    %10 = tpu.iota {dimensions = array<i32: 1>} : vector<8x128xi32>
    %cst_2 = arith.constant 0.000000e+00 : f32
    %11 = vector.broadcast %cst_2 : f32 to vector<8x128xf32>
    %12 = vector.extract_strided_slice %0 {offsets = [0, 0], sizes = [8, 1], strides = [1, 1]} : vector<8x8xi32> to vector<8x1xi32>
    %13 = vector.broadcast %12 : vector<8x1xi32> to vector<8x128xi32>
    %14 = arith.cmpi eq, %13, %10 : vector<8x128xi32>
    %15 = arith.extui %14 : vector<8x128xi1> to vector<8x128xi32>
    %16 = arith.sitofp %15 : vector<8x128xi32> to vector<8x128xf32>
    %17 = arith.addf %11, %16 : vector<8x128xf32>
    %18 = vector.extract_strided_slice %0 {offsets = [0, 1], sizes = [8, 1], strides = [1, 1]} : vector<8x8xi32> to vector<8x1xi32>
    %19 = vector.broadcast %18 : vector<8x1xi32> to vector<8x128xi32>
    %20 = arith.cmpi eq, %19, %10 : vector<8x128xi32>
    %21 = arith.extui %20 : vector<8x128xi1> to vector<8x128xi32>
    %22 = arith.sitofp %21 : vector<8x128xi32> to vector<8x128xf32>
    %23 = arith.addf %17, %22 : vector<8x128xf32>
    %24 = vector.extract_strided_slice %0 {offsets = [0, 2], sizes = [8, 1], strides = [1, 1]} : vector<8x8xi32> to vector<8x1xi32>
    %25 = vector.broadcast %24 : vector<8x1xi32> to vector<8x128xi32>
    %26 = arith.cmpi eq, %25, %10 : vector<8x128xi32>
    %27 = arith.extui %26 : vector<8x128xi1> to vector<8x128xi32>
    %28 = arith.sitofp %27 : vector<8x128xi32> to vector<8x128xf32>
    %29 = arith.addf %23, %28 : vector<8x128xf32>
    %30 = vector.extract_strided_slice %0 {offsets = [0, 3], sizes = [8, 1], strides = [1, 1]} : vector<8x8xi32> to vector<8x1xi32>
    %31 = vector.broadcast %30 : vector<8x1xi32> to vector<8x128xi32>
    %32 = arith.cmpi eq, %31, %10 : vector<8x128xi32>
    %33 = arith.extui %32 : vector<8x128xi1> to vector<8x128xi32>
    %34 = arith.sitofp %33 : vector<8x128xi32> to vector<8x128xf32>
    %35 = arith.addf %29, %34 : vector<8x128xf32>
    %36 = vector.extract_strided_slice %0 {offsets = [0, 4], sizes = [8, 1], strides = [1, 1]} : vector<8x8xi32> to vector<8x1xi32>
    %37 = vector.broadcast %36 : vector<8x1xi32> to vector<8x128xi32>
    %38 = arith.cmpi eq, %37, %10 : vector<8x128xi32>
    %39 = arith.extui %38 : vector<8x128xi1> to vector<8x128xi32>
    %40 = arith.sitofp %39 : vector<8x128xi32> to vector<8x128xf32>
    %41 = arith.addf %35, %40 : vector<8x128xf32>
    %42 = vector.extract_strided_slice %0 {offsets = [0, 5], sizes = [8, 1], strides = [1, 1]} : vector<8x8xi32> to vector<8x1xi32>
    %43 = vector.broadcast %42 : vector<8x1xi32> to vector<8x128xi32>
    %44 = arith.cmpi eq, %43, %10 : vector<8x128xi32>
    %45 = arith.extui %44 : vector<8x128xi1> to vector<8x128xi32>
    %46 = arith.sitofp %45 : vector<8x128xi32> to vector<8x128xf32>
    %47 = arith.addf %41, %46 : vector<8x128xf32>
    %48 = vector.extract_strided_slice %0 {offsets = [0, 6], sizes = [8, 1], strides = [1, 1]} : vector<8x8xi32> to vector<8x1xi32>
    %49 = vector.broadcast %48 : vector<8x1xi32> to vector<8x128xi32>
    %50 = arith.cmpi eq, %49, %10 : vector<8x128xi32>
    %51 = arith.extui %50 : vector<8x128xi1> to vector<8x128xi32>
    %52 = arith.sitofp %51 : vector<8x128xi32> to vector<8x128xf32>
    %53 = arith.addf %47, %52 : vector<8x128xf32>
    %54 = vector.extract_strided_slice %0 {offsets = [0, 7], sizes = [8, 1], strides = [1, 1]} : vector<8x8xi32> to vector<8x1xi32>
    %55 = vector.broadcast %54 : vector<8x1xi32> to vector<8x128xi32>
    %56 = arith.cmpi eq, %55, %10 : vector<8x128xi32>
    %57 = arith.extui %56 : vector<8x128xi1> to vector<8x128xi32>
    %58 = arith.sitofp %57 : vector<8x128xi32> to vector<8x128xf32>
    %59 = arith.addf %53, %58 : vector<8x128xf32>
    %60 = arith.truncf %59 : vector<8x128xf32> to vector<8x128xbf16>
    %c0_3 = arith.constant 0 : index
    %c0_4 = arith.constant 0 : index
    %61 = vector.load %arg2[%c0_3, %c0_4] : memref<128x32xbf16, #tpu.memory_space<vmem>>, vector<128x32xbf16>
    %cst_5 = arith.constant dense<0.000000e+00> : vector<8x32xf32>
    %62 = tpu.matmul %60, %61, %cst_5 {dimension_numbers = #tpu.dot_dimension_numbers<[1], [0], [0], [1], [0, 0, 1, 1], [], []>} : vector<8x128xbf16>, vector<128x32xbf16>, vector<8x32xf32> -> vector<8x32xf32>
    %63 = vector.broadcast %9 : vector<8x1xf32> to vector<8x32xf32>
    %64 = arith.mulf %62, %63 : vector<8x32xf32>
    %65 = arith.truncf %64 : vector<8x32xf32> to vector<8x32xbf16>
    %c0_6 = arith.constant 0 : index
    %c0_7 = arith.constant 0 : index
    %66 = vector.load %arg3[%c0_6, %c0_7] : memref<32x128xbf16, #tpu.memory_space<vmem>>, vector<32x128xbf16>
    %cst_8 = arith.constant dense<0.000000e+00> : vector<8x128xf32>
    %67 = tpu.matmul %65, %66, %cst_8 {dimension_numbers = #tpu.dot_dimension_numbers<[1], [0], [0], [1], [0, 0, 1, 1], [], []>} : vector<8x32xbf16>, vector<32x128xbf16>, vector<8x128xf32> -> vector<8x128xf32>
    %c0_9 = arith.constant 0 : index
    %c0_10 = arith.constant 0 : index
    %68 = vector.load %arg4[%c0_9, %c0_10] : memref<1x128xf32, #tpu.memory_space<vmem>>, vector<1x128xf32>
    %69 = vector.broadcast %68 : vector<1x128xf32> to vector<8x128xf32>
    %70 = arith.addf %67, %69 : vector<8x128xf32>
    %71 = math.tanh %70 : vector<8x128xf32>
    %c0_11 = arith.constant 0 : index
    %c0_12 = arith.constant 0 : index
    %72 = vector.load %arg5[%c0_11, %c0_12] : memref<1x128xf32, #tpu.memory_space<vmem>>, vector<1x128xf32>
    %73 = vector.broadcast %72 : vector<1x128xf32> to vector<8x128xf32>
    %74 = arith.mulf %71, %73 : vector<8x128xf32>
    %cst_13 = arith.constant dense<0.000000e+00> : vector<8xf32>
    %75 = vector.multi_reduction <add>, %74, %cst_13 [1] : vector<8x128xf32> to vector<8xf32>
    %76 = vector.shape_cast %75 : vector<8xf32> to vector<8x1xf32>
    %c0_14 = arith.constant 0 : index
    %c0_15 = arith.constant 0 : index
    %77 = memref.load %arg6[%c0_14, %c0_15] : memref<1x1xf32, #tpu.memory_space<smem>>
    %78 = vector.broadcast %77 : f32 to vector<8x1xf32>
    %79 = arith.addf %76, %78 : vector<8x1xf32>
    %80 = tpu.iota {dimensions = array<i32: 1>} : vector<8x128xi32>
    %c32_i32 = arith.constant 32 : i32
    %81 = vector.broadcast %c32_i32 : i32 to vector<8x128xi32>
    %82 = arith.cmpi eq, %80, %81 : vector<8x128xi32>
    %83 = vector.shape_cast %79 : vector<8x1xf32> to vector<8x1xf32>
    %84 = vector.broadcast %83 : vector<8x1xf32> to vector<8x128xf32>
    %85 = arith.select %82, %84, %71 : vector<8x128xi1>, vector<8x128xf32>
    %86 = arith.truncf %85 : vector<8x128xf32> to vector<8x128xbf16>
    %c0_16 = arith.constant 0 : index
    %c0_17 = arith.constant 0 : index
    %87 = vector.load %arg7[%c0_16, %c0_17] : memref<8x128xbf16, #tpu.memory_space<vmem>>, vector<8x128xbf16>
    tpu.vector_store %arg7[%c0_16, %c0_17], %86 {strides = array<i32>} : memref<8x128xbf16, #tpu.memory_space<vmem>>, vector<8x128xbf16>,
    return
  }
  func.func @transform_0(%arg0: i32) -> (i32, i32) {
    %c0_i32 = arith.constant 0 : i32
    %c0_i32_0 = arith.constant 0 : i32
    return %arg0, %c0_i32 : i32, i32
  }
  func.func @transform_1(%arg0: i32) -> (i32, i32) {
    %c0_i32 = arith.constant 0 : i32
    %c0_i32_0 = arith.constant 0 : i32
    %c0_i32_1 = arith.constant 0 : i32
    return %c0_i32, %c0_i32_0 : i32, i32
  }
  func.func @transform_2(%arg0: i32) -> (i32, i32) {
    %c0_i32 = arith.constant 0 : i32
    %c0_i32_0 = arith.constant 0 : i32
    %c0_i32_1 = arith.constant 0 : i32
    return %c0_i32, %c0_i32_0 : i32, i32
  }
  func.func @transform_3(%arg0: i32) -> (i32, i32) {
    %c0_i32 = arith.constant 0 : i32
    %c0_i32_0 = arith.constant 0 : i32
    %c0_i32_1 = arith.constant 0 : i32
    return %c0_i32, %c0_i32_0 : i32, i32
  }
  func.func @transform_4(%arg0: i32) -> (i32, i32) {
    %c0_i32 = arith.constant 0 : i32
    %c0_i32_0 = arith.constant 0 : i32
    %c0_i32_1 = arith.constant 0 : i32
    return %c0_i32, %c0_i32_0 : i32, i32
  }
  func.func @transform_5(%arg0: i32) -> (i32, i32) {
    %c0_i32 = arith.constant 0 : i32
    %c0_i32_0 = arith.constant 0 : i32
    %c0_i32_1 = arith.constant 0 : i32
    return %c0_i32, %c0_i32_0 : i32, i32
  }
  func.func @transform_6(%arg0: i32) -> (i32, i32) {
    %c0_i32 = arith.constant 0 : i32
    %c0_i32_0 = arith.constant 0 : i32
    return %arg0, %c0_i32 : i32, i32
  }
}

</mosaic_0001>

<bundles_post_ra>
// kernel: tpu_custom_call.1
= control target key start
LH: loop header
LB: loop body
LE: loop exit
PB: predicated region body
PF: predicated region fallthrough
CT: control target
= control target key end

     0   :  { %s992_s0 = inlined_call_operand.vmem [shape: s32[16,8], index: 0, kind: input, shape index: {}]   ;;  %s993_s1 = inlined_call_operand.vmem [shape: bf16[128,32], index: 1, kind: input, shape index: {}]   ;;  %s994_s2 = inlined_call_operand.vmem [shape: bf16[32,128], index: 2, kind: input, shape index: {}]   ;;  %s995_s3 = inlined_call_operand.vmem [shape: f32[1,128], index: 3, kind: input, shape index: {}]   ;;  %s996_s4 = inlined_call_operand.vmem [shape: f32[1,128], index: 4, kind: input, shape index: {}]   ;;  %s997_s5 = inlined_call_operand.<no memory space> [shape: f32[1,1], index: 5, kind: input, shape index: {}]   ;;  %s998_s6 = inlined_call_operand.hbm [shape: bf16[16,128], index: 6, kind: output, shape index: {}]  }
   0x1   :  { %11 = sst [smem:[#allocation2]] %s997_s5 }
   0x2   :  { %12 = vsyncpa [#allocation4], 0 }
   0x3   :  { %14 = vsyncpa [#allocation4 + $0x1], 0  ;;  %s837_s23 = smov 0   ;;  %s839_s24 = smov 0  }
   0x4   :  { %s841_s25 = smov 0   ;;  %s843_s26 = smov 0  }
   0x5 LB: > { %s858_s5 = sadd.s32 4294967295, %s786_s26   ;;  %s582_s27 = sadd.s32 4294967294, %s786_s26   ;;  %s786_s26 = sphi %s843_s26, %s1004_s26   ;;  %s782_s25 = sphi %s841_s25, %s1003_s25   ;;  %s778_s24 = sphi %s839_s24, %s1002_s24   ;;  %s774_s23 = sphi %s837_s23, %s1001_s23  }
   0x6   : > { %s862_s28 = sadd.s32 1, %s786_s26   ;;  %s158_s29 = sadd.s32 1, %s782_s25 }
   0x7   : > { %s155_s30 = ssub.s32 %s786_s26, %s862_s28  ;;  %p168_p0 = scmp.ne.s32.totalorder %s782_s25, %s778_s24 }
   0x8   : > { %p156_p1 = scmp.eq.s32.totalorder %s155_s30, 0  ;;  %p169_p2 = scmp.eq.s32.totalorder %s858_s5, 1 }
   0x9   : > { %p174_p3 = scmp.ne.s32.totalorder %s778_s24, %s774_s23  ;;  %p175_p4 = scmp.eq.s32.totalorder %s582_s27, 1 }
   0xa   : > { %s873_s7 = scalar_select %p156_p1, %s782_s25, %s158_s29  }
   0xb   : > { %p875_p5 = por %p169_p2, %p168_p0  ;;  %p879_p6 = por %p175_p4, %p174_p3 }
   0xc   : > { %p585_p7 = scmp.ge.s32.totalorder %s786_s26, 1  ;;  %p215_p8 = scmp.lt.s32.totalorder %s786_s26, 3 }
   0xe   : > { %p216_p9 = pnand %p585_p7, %p215_p8 }
   0xf   : > { %p244_p10 = scmp.lt.s32.totalorder (!%p216_p9), %s858_s5, 1  ;;  %s502_s27 = sld [smem:[#allocation2]] (!%p216_p9) }
  0x10   : > { %219 = sbr.rel (%p216_p9) target bundleno = 740 (0x2e4), region = 44  ;;  %s241_s29 = sand.u32 (!%p216_p9), 1, %s778_s24  }
  0x11   : > { %s586_s30 = sshll.u32 (!%p216_p9), %s241_s29, 2  ;;  %s611_s10 = sshll.u32 (!%p216_p9), %s858_s5, 6 }
  0x12   : > { %s243_s11 = scalar_lea.vmem (!%p216_p9), [#allocation3], %s586_s30  ;;  %s521_s15 = scalar_lea.hbm (!%p216_p9), %s998_s6, %s611_s10 }
  0x13   : > { %s510_s16 = scalar_lea.sflag (!%p216_p9), [#allocation4], %s241_s29 }
  0x15   : > { %v712_v0 = vld [vmem:[%s993_s1 + $0x38] sm:$0xff]   ;;  %v788_v1 = vmov 2   ;;  %v789_v2 = vmov 0   ;;  %s245_s12 = scalar_select %p244_p10, %s858_s5, 1  ;;  %v790_v3 = vmov 0.0   ;;  %v713_v4 = vld [vmem:[%s993_s1 + $0x30] sm:$0xff]   ;;  %v259_v21 = vlaneseq }
  0x16   : > { %705 = vset.pattern.permute.xlu1 %v788_v1  ;;  %703 = vset.pattern.permute.xlu0 %v789_v2  ;;  %v714_v6 = vld [vmem:[%s993_s1 + $0x28] sm:$0xff]   ;;  %v791_v7 = vmov 3   ;;  %v792_v8 = vmov 1   ;;  %v715_v9 = vld [vmem:[%s993_s1 + $0x20] sm:$0xff]   ;;  %v793_v10 = vmov 4   ;;  %v794_v11 = vmov 5  }
  0x17   : > { %626 = vmatprep.subr.bf16.mxu0 %v790_v3  ;;  %646 = vmatprep.subr.bf16.mxu1 %v790_v3  ;;  %s587_s13 = sshll.u32 %s245_s12, 3  ;;  %v716_v12 = vld [vmem:[%s993_s1 + $0x18] sm:$0xff]   ;;  %v795_v13 = vmov 6   ;;  %v796_v14 = vmov 7   ;;  %v717_v15 = vld [vmem:[%s993_s1 + $0x10] sm:$0xff]   ;;  %v718_v16 = vld [vmem:[%s993_s1 + $0x8] sm:$0xff]   ;;  %v503_v2 = vstv %s502_s27 }
  0x18   : > { %627 = vmatpush3.bf16.msra.mxu0 %v712_v0  ;;  %s247_s18 = scalar_lea.vmem %s992_s0, %s587_s13  ;;  %vm797_vm0 = vmmov 0   ;;  %v719_v17 = vld [vmem:[%s993_s1] sm:$0xff]   ;;  %vm253_vm2 = vcmask 64512   ;;  %v720_v20 = vld [vmem:[%s994_s2 + $0x8] sm:$0xff]   ;;  %v930_v24 = vand.u32 127, %v259_v21  ;;  %vm447_vm11 = vcmask 261120  }
  0x19   : > { %628 = vmatprep.subr.bf16.mxu0 %v790_v3  ;;  %v249_v5 = vld [vmem:[%s247_s18] sm:$0xff]  ;;  %642 = vmatprep.mubr.msk.bf16.mxu0 %vm797_vm0, %v790_v3  ;;  %s523_s12 = sshll.u32 %s243_s11, 4  ;;  %s798_s18 = smov [#allocation3]   ;;  %s524_s12 = int_to_ptr.vmem [resolvable:$true] %s523_s12 }
  0x1a   : > { %276 = vperm.xlu1 %705, %v249_v5   ;;  %262 = vperm.xlu0 %703, %v249_v5   ;;  %vm250_vm1 = vcmp.ne.s32.totalorder %v249_v5, 127  ;;  %v721_v47 = vld [vmem:[%s994_s2] sm:$0xff]   ;;  %vm505_vm12 = vcmp.eq.s32.totalorder %v930_v24, 32  ;;  %s726_s17 = scalar_lea.vmem %s524_s12, 64  ;;  %s730_s19 = sshll.u32 %s798_s18, 4  ;;  %s731_s19 = int_to_ptr.vmem [resolvable:$false] %s730_s19 }
  0x1b   : > { %650 = vmatprep.mubr.msk.bf16.mxu1 %vm797_vm0, %v790_v3  ;;  %v588_v18 = vsel %vm250_vm1, 1.0, %v790_v3  ;;  %647 = vmatpush3.bf16.msra.mxu1 %v720_v20  ;;  %v605_v57 = vld [vmem:[%s995_s3] ss:$0 sm:$0xff]  ;;  %p727_p11 = scmp.ne.s32.totalorder %s524_s12, %s726_s17  ;;  %s732_s5 = scalar_lea.vmem %s731_s19, 128 }
  0x1c   : > { %629 = vmatpush3.bf16.msra.mxu0 %v713_v4  ;;  %v254_v19 = vsel %vm253_vm2, %v588_v18, 0.0  ;;  %648 = vmatprep.subr.bf16.mxu1 %v790_v3  ;;  %v609_v63 = vld [vmem:[%s996_s4] ss:$0 sm:$0xff]  ;;  %p733_p0 = scmp.lt.s32.totalorder %s524_s12, %s731_s19  ;;  %p734_p1 = scmp.lt.s32.totalorder %s732_s5, %s726_s17 }
  0x1d   : > { %630 = vmatprep.subr.bf16.mxu0 %v790_v3  ;;  %p728_p12 = pnand %p727_p11, %p875_p5 }
  0x1e   : > { %706 = vset.pattern.permute.xlu1 %v791_v7  ;;  %704 = vset.pattern.permute.xlu0 %v792_v8  ;;  %p735_p2 = por %p734_p1, %p733_p0 }
  0x1f   : > { %283 = vperm.xlu1 %706, %v249_v5   ;;  %269 = vperm.xlu0 %704, %v249_v5   ;;  %p729_p13 = pneg %p728_p12 }
  0x20   : > { %631 = vmatpush3.bf16.msra.mxu0 %v714_v6  ;;  %649 = vmatpush3.bf16.msra.mxu1 %v721_v47 }
  0x21   : > { %632 = vmatprep.subr.bf16.mxu0 %v790_v3  ;;  %p736_p3 = pnand %p735_p2, %p729_p13 }
  0x23   : > { %707 = vset.pattern.permute.xlu1 %v793_v10  ;;  %708 = vset.pattern.permute.xlu0 %v794_v11 }
  0x24   : > { %290 = vperm.xlu1 %707, %v249_v5   ;;  %297 = vperm.xlu0 %708, %v249_v5  }
  0x25   : > { %633 = vmatpush3.bf16.msra.mxu0 %v715_v9 }
  0x26   : > { %634 = vmatprep.subr.bf16.mxu0 %v790_v3 }
  0x28   : > { %709 = vset.pattern.permute.xlu1 %v795_v13  ;;  %711 = vset.pattern.permute.xlu0 %v796_v14 }
  0x29   : > { %304 = vperm.xlu1 %709, %v249_v5   ;;  %635 = vmatpush3.bf16.msra.mxu0 %v716_v12 }
  0x2a   : > { %636 = vmatprep.subr.bf16.mxu0 %v790_v3 }
  0x2d   : > { %710 = vset.pattern.permute.xlu1 %v796_v14  ;;  %637 = vmatpush3.bf16.msra.mxu0 %v717_v15 }
  0x2e   : > { %311 = vperm.xlu1 %710, %v249_v5   ;;  %638 = vmatprep.subr.bf16.mxu0 %v790_v3 }
  0x31   : > { %639 = vmatpush3.bf16.msra.mxu0 %v718_v16 }
  0x32   : > { %640 = vmatprep.subr.bf16.mxu0 %v790_v3 }
  0x35   : > { %641 = vmatpush3.bf16.msra.mxu0 %v719_v17 }
  0x43   : > { %255 = vadd.xlane.f32.xlu0 %v254_v19 }
  0x95   : > { %v277_v22 = vpop.permute.xlu1 %276  ;;  %v263_v23 = vpop.permute.xlu0 %262 }
  0x96   : > { %vm264_vm3 = vcmp.eq.s32.totalorder %v263_v23, %v930_v24  ;;  %vm278_vm4 = vcmp.eq.s32.totalorder %v277_v22, %v930_v24 }
  0x97   : > { %v589_v27 = vsel %vm264_vm3, 1.0, %v790_v3  ;;  %v591_v30 = vsel %vm278_vm4, 1.0, %v790_v3 }
  0x9a   : > { %v284_v25 = vpop.permute.xlu1 %283  ;;  %v270_v26 = vpop.permute.xlu0 %269 }
  0x9b   : > { %vm271_vm5 = vcmp.eq.s32.totalorder %v270_v26, %v930_v24  ;;  %vm285_vm6 = vcmp.eq.s32.totalorder %v284_v25, %v930_v24 }
  0x9c   : > { %v590_v28 = vsel %vm271_vm5, 1.0, %v790_v3  ;;  %v592_v34 = vsel %vm285_vm6, 1.0, %v790_v3 }
  0x9d   : > { %v274_v29 = vadd.f32 %v590_v28, %v589_v27 }
  0x9f   : > { %v281_v31 = vadd.f32 %v591_v30, %v274_v29  ;;  %v291_v32 = vpop.permute.xlu1 %290  ;;  %v298_v33 = vpop.permute.xlu0 %297 }
  0xa0   : > { %vm292_vm7 = vcmp.eq.s32.totalorder %v291_v32, %v930_v24  ;;  %vm299_vm8 = vcmp.eq.s32.totalorder %v298_v33, %v930_v24 }
  0xa1   : > { %v288_v35 = vadd.f32 %v592_v34, %v281_v31  ;;  %v593_v36 = vsel %vm292_vm7, 1.0, %v790_v3  ;;  %v594_v38 = vsel %vm299_vm8, 1.0, %v790_v3 }
  0xa3   : > { %v295_v37 = vadd.f32 %v593_v36, %v288_v35 }
  0xa4   : > { %v305_v39 = vpop.permute.xlu1 %304 }
  0xa5   : > { %vm306_vm9 = vcmp.eq.s32.totalorder %v305_v39, %v930_v24  ;;  %v302_v40 = vadd.f32 %v594_v38, %v295_v37 }
  0xa6   : > { %v595_v41 = vsel %vm306_vm9, 1.0, %v790_v3 }
  0xa7   : > { %v309_v43 = vadd.f32 %v595_v41, %v302_v40 }
  0xa9   : > { %v312_v42 = vpop.permute.xlu1 %311 }
  0xaa   : > { %vm313_vm10 = vcmp.eq.s32.totalorder %v312_v42, %v930_v24 }
  0xab   : > { %v596_v44 = vsel %vm313_vm10, 1.0, %v790_v3 }
  0xac   : > { %v316_v45 = vadd.f32 %v596_v44, %v309_v43 }
  0xae   : > { %v317_v46 = vpack.c.bf16 %v316_v45, %v316_v45 }
  0xb0   : > { %643 = vmatmul.mubr.bf16.vlgmr.msra.gmra.mxu0 %v317_v46 }
  0xcc   : > { %v256_v48 = vpop.xlane.xlu0 %255 }
  0xcd   : > { %v257_v49 = vmax.f32 %v256_v48, 1.0 }
  0xcf   : > { %722 = vrcp.f32 %v257_v49 }
  0xdc   : > { %v723_v50 = vpop.eup %722 }
 0x170   : > { %v416_v51 = vpop.f32.mrf.mxu0 }
 0x171   : > { %v422_v52 = vmul.f32 %v723_v50, %v416_v51 }
 0x172   : > { %v644_v53 = vpop.f32.mrf.mxu0 }
 0x173   : > { %v423_v54 = vpack.c.bf16 %v422_v52, %v422_v52 }
 0x174   : > { %v419_v55 = vpop.f32.mrf.mxu0 }
 0x175   : > { %651 = vmatmul.mubr.msk.bf16.vlgmr.msra.gmra.mxu1 %vm447_vm11, %v423_v54 }
 0x176   : > { %v645_v56 = vpop.f32.mrf.mxu0 }
 0x235   : > { %v485_v58 = vpop.f32.mrf.mxu1 }
 0x236   : > { %v486_v59 = vadd.f32 %v605_v57, %v485_v58 }
 0x237   : > { %v652_v60 = vpop.f32.mrf.mxu1 }
 0x238   : > { %724 = vtanh.f32 %v486_v59 }
 0x239   : > { %v488_v61 = vpop.f32.mrf.mxu1 }
 0x23b   : > { %v653_v62 = vpop.f32.mrf.mxu1 }
 0x245   : > { %v725_v0 = vpop.eup %724 }
 0x246   : > { %v499_v1 = vmul.f32 %v725_v0, %v609_v63 }
 0x248   : > { %500 = vadd.xlane.f32.xlu1 %v499_v1 }
 0x2d1   : > { %v501_v3 = vpop.xlane.xlu1 %500 }
 0x2d2   : > { %v504_v4 = vadd.f32 %v503_v2, %v501_v3 }
 0x2d4   : > { %v506_v5 = vsel %vm505_vm12, %v504_v4, %v725_v0 }
 0x2d5   : > { %v507_v6 = vpack.c.bf16 %v506_v5, %v506_v5 }
 0x2d7   : > { %508 = vst [vmem:[%s243_s11] sm:$0xf] %v507_v6 }
 0x2d8   : > { %739 = shalt.err (!%p736_p3)
}
 0x2d9   : > { %s740_s20 = scalar_lea.hbm %s521_s15, 64  ;;  %s744_s27 = scalar_lea.hbm %s998_s6, 128 }
 0x2da   : > { %p741_p4 = scmp.ne.s32.totalorder %s521_s15, %s740_s20  ;;  %p745_p9 = scmp.lt.s32.totalorder %s521_s15, %s998_s6 }
 0x2db   : > { %p746_p10 = scmp.lt.s32.totalorder %s744_s27, %s740_s20 }
 0x2dc   : > { %p742_p7 = pnand %p741_p4, %p875_p5 }
 0x2dd   : > { %p747_p11 = por %p746_p10, %p745_p9 }
 0x2de   : > { %p743_p8 = pneg %p742_p7 }
 0x2e0   : > { %p748_p12 = pnand %p747_p11, %p743_p8 }
 0x2e2   : > { %751 = shalt.err (!%p748_p12)
}
 0x2e3   : > { %654 = dma.vmem_to_hbm [thread:$0]  (%p875_p5), %s524_s12, 64, %s521_s15, %s510_s16  }
 0x2e4 PF: > { %p660_p13 = scmp.ge.s32.totalorder %s786_s26, 2  ;;  %s535_s10 = sand.u32 1, %s774_s23  }
 0x2e5   : > { %s536_s11 = scalar_lea.sflag [#allocation4], %s535_s10 }
 0x2e6   : > { %p657_p0 = pnand %p660_p13, %p879_p6 }
 0x2e8   : > { %p658_p1 = pneg %p657_p0 }
 0x2ea   : > { %769 = dma.done.wait (%p658_p1), %s536_s11, 64  }
 0x2eb   : > { %771 = vsyncadd (%p658_p1), %s536_s11, 4294967232  ;;  %p17_p2 = scmp.ge.s32.totalorder %s862_s28, 4   ;;  %s1001_s23 = smov %s778_s24 }
 0x2ec   : > { %s1002_s24 = smov %s782_s25  ;;  %s1003_s25 = smov %s873_s7 }
 0x2ed   : > { %s1004_s26 = smov %s862_s28  ;;  %19 = sbr.rel (!%p17_p2) target bundleno = 5 (0x5), region = 79 }
 0x2f2   :  { %541 = vsyncpa [#allocation4], 1 }
 0x2f3   :  { %543 = vsyncpa [#allocation4 + $0x1], 1 }

</bundles_post_ra>
